<compile_context>
chip_gen: v7x
topology: tpu7x:2x2x1
jax: 0.10.0
libtpu: 0.0.40
codegen_flags: <defaults>
</compile_context>

<pallas_src>
import functools

import jax
import jax.numpy as jnp
from jax.experimental import pallas as pl
from jax.experimental.pallas import tpu as pltpu


H = 768                      # RoBERTa hidden size
D1 = 256                     # linear1 out features
TILE_BYTES_MAX = 12 << 20    # per input buffer (double-buffered by Pallas)


# ----------------------------- Pallas kernel ------------------------------ #
def _colsum_kernel(h_ref, out_ref, *, n_valid, tile_n, precision):
    """MXU column sum of one (tile_n, H) tile into an (8, H) partial block."""
    dt = h_ref.dtype
    hdim = h_ref.shape[1]
    # (8, tile_n) row selector: sublane 0 is ones, sublanes 1..7 are zeros, so
    # sel @ h lands the column sum in row 0 of the (8, hdim) output block and
    # exact zeros elsewhere (summed away for free in the epilogue).
    sel = (jax.lax.broadcasted_iota(jnp.int32, (8, tile_n), 0) == 0).astype(dt)

    def emit(h_tile):
        out_ref[...] = jnp.dot(sel, h_tile,
                               preferred_element_type=jnp.float32,
                               precision=precision)

    rem = n_valid % tile_n
    if rem == 0:
        emit(h_ref[...])                       # full tiles: no masking at all
    else:
        last = pl.num_programs(0) - 1

        @pl.when(pl.program_id(0) != last)
        def _():
            emit(h_ref[...])

        @pl.when(pl.program_id(0) == last)
        def _():
            # Rows >= rem of the last block are out-of-bounds garbage; select
            # them to zero (NaN-safe) before they reach the MXU.
            row = jax.lax.broadcasted_iota(jnp.int32, (tile_n, hdim), 0)
            emit(jnp.where(row < rem, h_ref[...], 0.0).astype(dt))


# ------------------------------- wrapper ----------------------------------- #
def _pick_tile_rows(n_rows, itemsize):
    """Rows/tile: big enough to amortize the ~0.35us per-step overhead, small
    enough to double-buffer in scoped VMEM on every generation, and >=2 tiles
    whenever possible so both v7x TensorCores get work."""
    if n_rows < 16:
        return n_rows                                   # single full block
    t_budget = max(8, (TILE_BYTES_MAX // (H * itemsize)) // 8 * 8)
    t_half = (((n_rows + 1) // 2) + 7) // 8 * 8         # ceil(n/2) -> mult of 8
    return min(t_budget, t_half)


def custom_head(hidden, w1, b1, w2, b2, *, tile_rows=None):
    """scalar = mean(linear2(linear1(hidden)))  via a streaming column-sum."""
    B, S, Hh = hidden.shape
    assert Hh == H
    N = B * S

    # Stream the backbone output in its native dtype: no standalone astype
    # (a separate convert would add 4 bytes/element of HBM traffic).
    h2 = hidden.reshape(N, Hh)
    itemsize = jnp.dtype(h2.dtype).itemsize

    if tile_rows is None:
        tile_n = _pick_tile_rows(N, itemsize)
    else:
        t = min(tile_rows, N)
        tile_n = t if t == N else max(8, (t // 8) * 8)
    num_tiles = pl.cdiv(N, tile_n)

    # Exact f32 contraction when streaming f32; bf16 inputs already accumulate
    # exactly in f32 on the MXU.
    prec = jax.lax.Precision.HIGHEST if h2.dtype == jnp.float32 else None

    partials = pl.pallas_call(
        functools.partial(_colsum_kernel, n_valid=N, tile_n=tile_n,
                          precision=prec),
        out_shape=jax.ShapeDtypeStruct((num_tiles * 8, Hh), jnp.float32),
        grid=(num_tiles,),
        in_specs=[pl.BlockSpec((tile_n, Hh), lambda i: (i, 0))],
        out_specs=pl.BlockSpec((8, Hh), lambda i: (i, 0)),
        compiler_params=pltpu.CompilerParams(
            dimension_semantics=("parallel",),   # independent tiles -> megacore
            vmem_limit_bytes=48 << 20),
        cost_estimate=pl.CostEstimate(
            flops=2 * 8 * N * Hh,
            transcendentals=0,
            bytes_accessed=N * Hh * itemsize + num_tiles * 8 * Hh * 4),
    )(h2)

    # Tiny O(H*D1) epilogue in plain JAX (exact f32): fold both linears/biases.
    hi = jax.lax.Precision.HIGHEST
    w1f, b1f = w1.astype(jnp.float32), b1.astype(jnp.float32)
    w2f, b2f = w2.astype(jnp.float32), b2.astype(jnp.float32)
    w_eff = jnp.dot(w1f, w2f, precision=hi)[:, 0]                 # (H,)
    c = jnp.dot(b1f, w2f, precision=hi)[0, 0] + b2f[0, 0]         # scalar
    col_sum = jnp.sum(partials, axis=0)                           # (H,)
    return jnp.dot(col_sum, w_eff, precision=hi) / jnp.float32(N) + c


# ------------------------------- glue / setup ------------------------------ #
def synthetic_backbone(ids, mask, emb_table):
    """Deterministic stand-in for roberta_output.hidden_states[-1]."""
    # TODO(synk): replace with a real transformer encoder (pretrained weights).
    h = emb_table[ids]                              # (B, S, 768)
    return h * mask[..., None].astype(h.dtype)      # zero out padded tokens


if __name__ == "__main__":
    B, S, VOCAB = 2, 24, 100

    key = jax.random.PRNGKey(0)
    k_ids, k_emb, k_w1, k_b1, k_w2, k_b2 = jax.random.split(key, 6)

    ids = jax.random.randint(k_ids, (B, S), 0, VOCAB, dtype=jnp.int32)
    mask = jnp.ones((B, S), dtype=jnp.int32).at[:, -2:].set(0)

    emb_table = jax.random.normal(k_emb, (VOCAB, H), dtype=jnp.float32) * 0.02
    w1 = jax.random.normal(k_w1, (H, D1), dtype=jnp.float32) * (1.0 / jnp.sqrt(H))
    b1 = jax.random.normal(k_b1, (1, D1), dtype=jnp.float32) * 0.01
    w2 = jax.random.normal(k_w2, (D1, 1), dtype=jnp.float32) * (1.0 / jnp.sqrt(D1))
    b2 = jax.random.normal(k_b2, (1, 1), dtype=jnp.float32) * 0.01

    hidden = synthetic_backbone(ids, mask, emb_table)   # (B, S, 768) f32

    # 1) auto tiling: two even 24-row tiles, no masking branch emitted.
    out_auto = jax.block_until_ready(custom_head(hidden, w1, b1, w2, b2))
    # 2) forced 32-row tiles: ragged last tile exercises the pl.when mask path.
    out_masked = jax.block_until_ready(
        custom_head(hidden, w1, b1, w2, b2, tile_rows=32))

    # Exact-f32 reference of the head (matches the PyTorch module's math).
    N = B * S
    hi = jax.lax.Precision.HIGHEST
    h_f32 = hidden.reshape(N, H).astype(jnp.float32)
    ref = jnp.mean(
        jnp.dot(jnp.dot(h_f32, w1, precision=hi) + b1, w2, precision=hi) + b2)

    assert jnp.allclose(out_auto, ref, rtol=1e-4, atol=1e-5), (out_auto, ref)
    assert jnp.allclose(out_masked, ref, rtol=1e-4, atol=1e-5), (out_masked, ref)

    print("KERNEL_OK")
</pallas_src>

<mosaic_0001>
module attributes {stable_mosaic.version = 11 : i64} {
  func.func @_colsum_kernel(%arg0: i32, %arg1: memref<24x768xf32, #tpu.memory_space<vmem>>, %arg2: memref<8x768xf32, #tpu.memory_space<vmem>>) attributes {dimension_semantics = [#tpu.dimension_semantics<parallel>], iteration_bounds = array<i64: 2>, scalar_prefetch = 0 : i64, scratch_operands = 0 : i64, tpu.core_type = #tpu.core_type<tc>, window_params = [{transform_indices = @transform_0, window_bounds = array<i64: 24, 768>}, {transform_indices = @transform_1, window_bounds = array<i64: 8, 768>}]} {
    %0 = tpu.iota {dimensions = array<i32: 0>} : vector<8x24xi32>
    %c0_i32 = arith.constant 0 : i32
    %1 = vector.broadcast %c0_i32 : i32 to vector<8x24xi32>
    %2 = arith.cmpi eq, %0, %1 : vector<8x24xi32>
    %3 = arith.extui %2 : vector<8x24xi1> to vector<8x24xi32>
    %4 = arith.sitofp %3 : vector<8x24xi32> to vector<8x24xf32>
    %c0 = arith.constant 0 : index
    %c0_0 = arith.constant 0 : index
    %5 = vector.load %arg1[%c0, %c0_0] : memref<24x768xf32, #tpu.memory_space<vmem>>, vector<24x768xf32>
    %cst = arith.constant dense<0.000000e+00> : vector<8x768xf32>
    %6 = tpu.matmul %4, %5, %cst {dimension_numbers = #tpu.dot_dimension_numbers<[1], [0], [0], [1], [0, 0, 1, 1], [], []>, precision = #tpu.contract_precision<fp32>} : vector<8x24xf32>, vector<24x768xf32>, vector<8x768xf32> -> vector<8x768xf32>
    %c0_1 = arith.constant 0 : index
    %c0_2 = arith.constant 0 : index
    %7 = vector.load %arg2[%c0_1, %c0_2] : memref<8x768xf32, #tpu.memory_space<vmem>>, vector<8x768xf32>
    tpu.vector_store %arg2[%c0_1, %c0_2], %6 {strides = array<i32>} : memref<8x768xf32, #tpu.memory_space<vmem>>, vector<8x768xf32>,
    return
  }
  func.func @transform_0(%arg0: i32) -> (i32, i32) {
    %c0_i32 = arith.constant 0 : i32
    %c0_i32_0 = arith.constant 0 : i32
    return %arg0, %c0_i32 : i32, i32
  }
  func.func @transform_1(%arg0: i32) -> (i32, i32) {
    %c0_i32 = arith.constant 0 : i32
    %c0_i32_0 = arith.constant 0 : i32
    return %arg0, %c0_i32 : i32, i32
  }
}

</mosaic_0001>

<bundles_post_ra>
// kernel: tpu_custom_call.1
= control target key start
LH: loop header
LB: loop body
LE: loop exit
PB: predicated region body
PF: predicated region fallthrough
CT: control target
= control target key end

     0   :  { %6 = vsyncpa [#allocation3], 0  ;;  %s2558_s0 = inlined_call_operand.hbm [shape: f32[48,768], index: 0, kind: input, shape index: {}]   ;;  %s2559_s1 = inlined_call_operand.hbm [shape: f32[16,768], index: 1, kind: output, shape index: {}]  }
   0x1   :  { %8 = vsyncpa [#allocation3 + $0x1], 0 }
   0x2   :  { %9 = vsyncpa [#allocation4], 0 }
   0x3   :  { %11 = vsyncpa [#allocation4 + $0x1], 0  ;;  %s2094_s6 = smov 0   ;;  %s2096_s7 = smov 0  }
   0x4   :  { %s2098_s8 = smov 0   ;;  %s2100_s9 = smov 0  }
   0x5 LB: > { %s2115_s10 = sadd.s32 4294967295, %s2077_s9   ;;  %s1806_s11 = sadd.s32 4294967294, %s2077_s9   ;;  %s2077_s9 = sphi %s2100_s9, %s2572_s9   ;;  %s2073_s8 = sphi %s2098_s8, %s2571_s8   ;;  %s2069_s7 = sphi %s2096_s7, %s2570_s7   ;;  %s2065_s6 = sphi %s2094_s6, %s2569_s6  }
   0x6   : > { %s2119_s12 = sadd.s32 1, %s2077_s9   ;;  %s24_s13 = sadd.s32 1, %s2073_s8 }
   0x7   : > { %s21_s14 = ssub.s32 %s2077_s9, %s2119_s12  ;;  %p31_p0 = scmp.ne.s32.totalorder %s2073_s8, %s2069_s7 }
   0x8   : > { %p22_p1 = scmp.eq.s32.totalorder %s21_s14, 0  ;;  %p32_p2 = scmp.eq.s32.totalorder %s2077_s9, 0 }
   0x9   : > { %p37_p3 = scmp.ne.s32.totalorder %s2069_s7, %s2065_s6  ;;  %p38_p4 = scmp.eq.s32.totalorder %s2115_s10, 0 }
   0xa   : > { %s2131_s15 = scalar_select %p22_p1, %s2073_s8, %s24_s13  }
   0xb   : > { %p33_p5 = por %p32_p2, %p31_p0  ;;  %p2133_p6 = por %p38_p4, %p37_p3 }
   0xc   : > { %p61_p7 = scmp.eq.s32.totalorder %s2115_s10, 1  ;;  %p67_p8 = scmp.eq.s32.totalorder %s1806_s11, 1 }
   0xd   : > { %p1943_p10 = scmp.lt.s32.totalorder %s2077_s9, 2  ;;  %s87_s19 = sand.u32 1, %s2073_s8  }
   0xe   : > { %p2140_p11 = por %p61_p7, %p31_p0  ;;  %p2144_p12 = por %p67_p8, %p37_p3 }
   0xf   : > { %s1926_s20 = smul.u32 144, %s87_s19  ;;  %p2150_p13 = pnand %p1943_p10, %p33_p5 }
  0x10   : > { %s2562_s17 = scalar_select %p2140_p11, 1, 0 }
  0x11   : > { %s2563_s18 = scalar_select %p2144_p12, 1, 0 }
  0x12   : > { %s1944_s21 = smul.u32 2304, %s2077_s9  ;;  %s91_s26 = scalar_lea.vmem [#allocation2], %s1926_s20 }
  0x13   : > { %s99_s27 = sshll.u32 %s91_s26, 4  ;;  %s2162_s28 = scalar_lea.sflag [#allocation3], %s87_s19  ;;  %s2159_s27 = int_to_ptr.vmem [resolvable:$true] %s99_s27 }
  0x14   : > { %s2157_s25 = scalar_lea.hbm %s2558_s0, %s1944_s21  ;;  %p1983_p2 = pneg %p2150_p13 }
  0x15   : > { %s1981_s29 = scalar_lea.hbm %s2157_s25, 2304  ;;  %s1986_s3 = scalar_lea.hbm %s2558_s0, 4608 }
  0x16   : > { %p1982_p1 = scmp.ne.s32.totalorder %s2157_s25, %s1981_s29  ;;  %p1987_p5 = scmp.lt.u32.totalorder %s2157_s25, %s2558_s0 }
  0x17   : > { %p1988_p7 = scmp.lt.u32.totalorder %s1986_s3, %s1981_s29  ;;  %p1990_p10 = scmp.lt.u32.totalorder %s1981_s29, %s2157_s25 }
  0x18   : > { %p1984_p3 = pnand %p1983_p2, %p1982_p1 }
  0x19   : > { %p1989_p8 = por %p1988_p7, %p1987_p5 }
  0x1a   : > { %p1985_p4 = pneg %p1984_p3 }
  0x1b   : > { %p1991_p9 = por %p1990_p10, %p1989_p8 }
  0x1d   : > { %p1992_p0 = pnand %p1991_p9, %p1985_p4 }
  0x1f   : > { %1995 = shalt.err (!%p1992_p0)
}
  0x20   : > { %s1996_s11 = scalar_lea.vmem %s2159_s27, 2304  ;;  %s2079_s13 = smov [#allocation2]  }
  0x21   : > { %p1997_p1 = scmp.ne.s32.totalorder %s2159_s27, %s1996_s11  ;;  %s2001_s14 = sshll.u32 %s2079_s13, 4  ;;  %s2002_s14 = int_to_ptr.vmem [resolvable:$false] %s2001_s14 }
  0x22   : > { %s2003_s19 = scalar_lea.vmem %s2002_s14, 4608  ;;  %p2004_p11 = scmp.lt.s32.totalorder %s2159_s27, %s2002_s14 }
  0x23   : > { %p1999_p3 = pnand %p1997_p1, %p1983_p2  ;;  %p2005_p5 = scmp.lt.s32.totalorder %s2003_s19, %s1996_s11 }
  0x25   : > { %p2000_p12 = pneg %p1999_p3  ;;  %p2006_p7 = por %p2005_p5, %p2004_p11 }
  0x27   : > { %p2007_p8 = pnand %p2006_p7, %p2000_p12 }
  0x29   : > { %2010 = shalt.err (!%p2007_p8)
}
  0x2a   : > { %s2080_s20 = smov 768   ;;  %s2081_s21 = smov 48  }
  0x2b   : > { %1938 = dma.hbm_to_vmem [thread:$0]  (!%p2150_p13), %s2157_s25, 2304, %s2159_s27, %s2162_s28, %s2080_s20, %s2080_s20, %s2081_s21  }
  0x2c   : > { %p107_p9 = scmp.lt.s32.totalorder %s2077_s9, 3  ;;  %p2565_p0 = scmp.ge.s32.totalorder %s2077_s9, 1 }
  0x2e   : > { %p108_p2 = pnand %p2565_p0, %p107_p9 }
  0x2f   : > { %s2194_s23 = sand.u32 (!%p108_p2), 1, %s2069_s7  }
  0x30   : > { %111 = sbr.rel (%p108_p2) target bundleno = 360 (0x168), region = 24  ;;  %s114_s26 = scalar_lea.sflag (!%p108_p2), [#allocation3], %s2194_s23 }
  0x31   : > { %s1928_s24 = smul.u32 (!%p108_p2), 144, %s2194_s23 }
  0x33   : > { %s2198_s29 = scalar_lea.vmem (!%p108_p2), [#allocation2], %s1928_s24 }
  0x37   : > { %2056 = dma.done.wait (%p2133_p6), %s114_s26, 2304  }
  0x38   : > { %2058 = vsyncadd (%p2133_p6), %s114_s26, 4294964992  ;;  %v137_v0 = vlaneseq  ;;  %v2082_v1 = vmov 0.0   ;;  %vm160_vm0 = vcmask 195584   ;;  %v143_v5 = vld [vmem:[%s2198_s29 + $0x8] sm:$0xff]  ;;  %v149_v6 = vld [vmem:[%s2198_s29 + $0x38] sm:$0xff]  ;;  %s1929_s16 = smul.u32 48, %s2194_s23 }
  0x39   : > { %234 = vmatprep.mubr.f32.mxu1 %v2082_v1  ;;  %503 = vmatprep.mubr.f32.mxu0 %v2082_v1  ;;  %v142_v7 = vld [vmem:[%s2198_s29] sm:$0xff]  ;;  %v164_v9 = vand.u32 4294901760, %v143_v5  ;;  %v168_v10 = vand.u32 4294901760, %v149_v6  ;;  %v148_v11 = vld [vmem:[%s2198_s29 + $0x30] sm:$0xff]  ;;  %v155_v13 = vld [vmem:[%s2198_s29 + $0x68] sm:$0xff]  ;;  %s1930_s25 = smul.u32 768, %s2115_s10 }
  0x3a   : > { %v138_v2 = vshrl.u32 %v137_v0, 7  ;;  %v166_v12 = vand.u32 4294901760, %v142_v7  ;;  %v154_v14 = vld [vmem:[%s2198_s29 + $0x60] sm:$0xff]  ;;  %v170_v15 = vand.u32 4294901760, %v148_v11  ;;  %v2219_v16 = vand.u32 4294901760, %v155_v13  ;;  %v2263_v37 = vld [vmem:[%s2198_s29 + $0x18] sm:$0xff] }
  0x3b   : > { %v2221_v17 = vand.u32 4294901760, %v154_v14  ;;  %v2226_v19 = vpack.c.bf16 %v168_v10, %v164_v9  ;;  %v2228_v20 = vsub.f32 %v143_v5, %v164_v9  ;;  %v2230_v21 = vsub.f32 %v149_v6, %v168_v10  ;;  %v151_v41 = vld [vmem:[%s2198_s29 + $0x48] sm:$0xff]  ;;  %v153_v47 = vld [vmem:[%s2198_s29 + $0x58] sm:$0xff]  ;;  %v2272_v48 = vld [vmem:[%s2198_s29 + $0x10] sm:$0xff]  ;;  %s135_s22 = scalar_lea.vmem [#allocation5], %s1929_s16  ;;  %s2514_s2 = scalar_lea.hbm %s2559_s1, %s1930_s25 }
  0x3c   : > { %vm139_vm1 = vcmp.eq.s32.totalorder %v138_v2, 0  ;;  %v2232_v22 = vsub.f32 %v142_v7, %v166_v12  ;;  %v2234_v23 = vpack.c.bf16 %v170_v15, %v166_v12  ;;  %v2236_v24 = vsub.f32 %v148_v11, %v170_v15  ;;  %v147_v42 = vld [vmem:[%s2198_s29 + $0x28] sm:$0xff]  ;;  %v2279_v53 = vld [vmem:[%s2198_s29 + $0x40] sm:$0xff]  ;;  %v2289_v62 = vld [vmem:[%s2198_s29 + $0x50] sm:$0xff]  ;;  %s1736_s27 = sshll.u32 %s135_s22, 4  ;;  %s1722_s10 = scalar_lea.sflag [#allocation4], %s2194_s23  ;;  %s2516_s27 = int_to_ptr.vmem [resolvable:$true] %s1736_s27 }
  0x3d   : > { %v2207_v3 = vsel %vm139_vm1, 1.0, %v2082_v1  ;;  %v2239_v25 = vsub.f32 %v154_v14, %v2221_v17  ;;  %1825 = vmatprep.subr.bf16.mxu1 %v2226_v19  ;;  %1837 = vmatprep.subr.bf16.mxu0 %v2226_v19  ;;  %v248_v27 = vand.u32 4294901760, %v2228_v20  ;;  %v260_v28 = vand.u32 4294901760, %v2230_v21  ;;  %v2284_v58 = vld [vmem:[%s2198_s29 + $0x20] sm:$0xff]  ;;  %v157_v15 = vld [vmem:[%s2198_s29 + $0x78] sm:$0xff]  ;;  %s2011_s3 = scalar_lea.vmem %s2516_s27, 768 }
  0x3e   : > { %v162_v4 = vsel %vm160_vm0, %v2207_v3, 0  ;;  %v254_v29 = vand.u32 4294901760, %v2232_v22  ;;  %v2249_v30 = vsub.f32 %v155_v13, %v2219_v16  ;;  %1827 = vmatpush1.bf16.msra.mxu1 %v2234_v23  ;;  %1839 = vmatpush1.bf16.msra.mxu0 %v2234_v23  ;;  %v266_v31 = vand.u32 4294901760, %v2236_v24  ;;  %p2012_p6 = scmp.ne.s32.totalorder %s2516_s27, %s2011_s3  ;;  %p2566_p11 = scmp.ne.s32.totalorder %s2562_s17, 0 }
  0x3f   : > { %v2214_v8 = vsub.f32 %v162_v4, %v162_v4  ;;  %v278_v32 = vand.u32 4294901760, %v2239_v25  ;;  %173 = vmatprep.subr.mxu1 %v2219_v16  ;;  %442 = vmatprep.subr.mxu0 %v2219_v16  ;;  %v249_v34 = vsub.f32 %v2228_v20, %v248_v27  ;;  %v261_v35 = vsub.f32 %v2230_v21, %v260_v28  ;;  %v156_v4 = vld [vmem:[%s2198_s29 + $0x70] sm:$0xff]  ;;  %s2083_s4 = smov [#allocation5]  }
  0x40   : > { %v272_v36 = vand.u32 4294901760, %v2249_v30  ;;  %v1840_v38 = vpack.c.bf16 %v260_v28, %v248_v27  ;;  %v255_v39 = vsub.f32 %v2232_v22, %v254_v29  ;;  %v267_v40 = vsub.f32 %v2236_v24, %v266_v31  ;;  %v158_v27 = vld [vmem:[%s2198_s29 + $0x80] sm:$0xff]  ;;  %p2013_p12 = pnand %p2012_p6, %p2566_p11  ;;  %s2015_s5 = sshll.u32 %s2083_s4, 4  ;;  %s2016_s5 = int_to_ptr.vmem [resolvable:$false] %s2015_s5 }
  0x41   : > { %v2224_v18 = vand.u32 4294901760, %v2214_v8  ;;  %v250_v43 = vand.u32 4294901760, %v249_v34  ;;  %v262_v44 = vand.u32 4294901760, %v261_v35  ;;  %v1842_v45 = vpack.c.bf16 %v266_v31, %v254_v29  ;;  %v159_v31 = vld [vmem:[%s2198_s29 + $0x88] sm:$0xff]  ;;  %s2017_s11 = scalar_lea.vmem %s2016_s5, 1536  ;;  %p2018_p4 = scmp.lt.s32.totalorder %s2516_s27, %s2016_s5 }
  0x42   : > { %v273_v46 = vsub.f32 %v2249_v30, %v272_v36  ;;  %175 = vmatpush1.msra.mxu1 %v2221_v17  ;;  %444 = vmatpush1.msra.mxu0 %v2221_v17  ;;  %v256_v49 = vand.u32 4294901760, %v255_v39  ;;  %v268_v50 = vand.u32 4294901760, %v267_v40  ;;  %v279_v51 = vsub.f32 %v2239_v25, %v278_v32  ;;  %p2014_p13 = pneg %p2013_p12  ;;  %p2019_p10 = scmp.lt.s32.totalorder %s2017_s11, %s2011_s3 }
  0x43   : > { %v238_v26 = vsub.f32 %v2214_v8, %v2224_v18  ;;  %v681_v52 = vand.u32 4294901760, %v2263_v37  ;;  %507 = vmatmul.mubr.f32.vlgmr.msra.gmra.mrb[0].mxu0 %v2224_v18  ;;  %v1828_v54 = vpack.c.bf16 %v262_v44, %v250_v43  ;;  %v685_v56 = vand.u32 4294901760, %v151_v41  ;;  %1841 = vmatprep.subr.bf16.mxu0 %v1840_v38 }
  0x44   : > { %v274_v55 = vand.u32 4294901760, %v273_v46  ;;  %v1198_v57 = vand.u32 4294901760, %v147_v42  ;;  %v1830_v59 = vpack.c.bf16 %v268_v50, %v256_v49  ;;  %v1202_v60 = vand.u32 4294901760, %v153_v47  ;;  %1843 = vmatpush1.bf16.msra.mxu0 %v1842_v45  ;;  %595 = vmatprep.mubr.f32.mxu0 %v2082_v1  ;;  %p2020_p1 = por %p2019_p10, %p2018_p4 }
  0x45   : > { %v2257_v33 = vand.u32 4294901760, %v238_v26  ;;  %v683_v61 = vand.u32 4294901760, %v2272_v48  ;;  %1829 = vmatprep.subr.bf16.mxu1 %v1828_v54  ;;  %v2292_v63 = vsub.f32 %v2263_v37, %v681_v52  ;;  %v2294_v0 = vsub.f32 %v151_v41, %v685_v56  ;;  %532 = vmatprep.subr.mxu0 %v272_v36 }
  0x46   : > { %v687_v2 = vand.u32 4294901760, %v2279_v53  ;;  %v280_v5 = vand.u32 4294901760, %v279_v51  ;;  %v2298_v6 = vsub.f32 %v147_v42, %v1198_v57  ;;  %v2300_v7 = vsub.f32 %v153_v47, %v1202_v60  ;;  %p2021_p3 = pnand %p2020_p1, %p2014_p13 }
  0x47   : > { %240 = vmatmul.mubr.f32.vlgmr.msra.gmra.mrb[0].mxu1 %v2257_v33  ;;  %v1200_v9 = vand.u32 4294901760, %v2284_v58  ;;  %v2307_v10 = vsub.f32 %v2272_v48, %v683_v61  ;;  %v1204_v12 = vand.u32 4294901760, %v2289_v62  ;;  %v1832_v13 = vpack.c.bf16 %v2230_v21, %v2228_v20 }
  0x48   : > { %340 = vmatprep.mubr.f32.mxu1 %v2082_v1  ;;  %1831 = vmatpush1.bf16.msra.mxu1 %v1830_v59  ;;  %v2310_v11 = vsub.f32 %v2279_v53, %v687_v2  ;;  %v2319_v26 = vand.u32 4294901760, %v156_v4  ;;  %v1834_v28 = vpack.c.bf16 %v2236_v24, %v2232_v22  ;;  %v765_v34 = vand.u32 4294901760, %v2292_v63 }
  0x49   : > { %275 = vmatprep.subr.mxu1 %v274_v55  ;;  %v2316_v14 = vsub.f32 %v2284_v58, %v1200_v9  ;;  %536 = vmatpush1.msra.mxu0 %v278_v32  ;;  %v2325_v29 = vsub.f32 %v2289_v62, %v1204_v12  ;;  %v777_v35 = vand.u32 4294901760, %v2294_v0  ;;  %v2331_v20 = vpack.c.bf16 %v685_v56, %v681_v52 }
  0x4a   : > { %1845 = vmatprep.subr.bf16.mxu0 %v2226_v19  ;;  %v2333_v21 = vpack.c.bf16 %v1202_v60, %v1198_v57  ;;  %v1282_v32 = vand.u32 4294901760, %v2298_v6  ;;  %v1294_v36 = vand.u32 4294901760, %v2300_v7  ;;  %v2341_v22 = vand.u32 4294901760, %v157_v15 }
  0x4b   : > { %1813 = vmatmul.mubr.msk.f32.vlgmr.msra.gmra.mrb[0].mxu0 %vm160_vm0, %v2207_v3  ;;  %v2343_v24 = vand.u32 4294901760, %v158_v27  ;;  %v771_v19 = vand.u32 4294901760, %v2307_v10  ;;  %v783_v37 = vand.u32 4294901760, %v2310_v11  ;;  %v2348_v38 = vand.u32 4294901760, %v159_v31 }
  0x4c   : > { %281 = vmatpush1.msra.mxu1 %v280_v5  ;;  %1847 = vmatpush1.bf16.msra.mxu0 %v2234_v23  ;;  %v2351_v39 = vsub.f32 %v156_v4, %v2319_v26  ;;  %v1288_v40 = vand.u32 4294901760, %v2316_v14  ;;  %v1300_v41 = vand.u32 4294901760, %v2325_v29  ;;  %v766_v42 = vsub.f32 %v2292_v63, %v765_v34 }
  0x4d   : > { %1833 = vmatprep.subr.bf16.mxu1 %v1832_v13  ;;  %612 = vmatprep.subr.mxu0 %v2219_v16  ;;  %v778_v23 = vsub.f32 %v2294_v0, %v777_v35  ;;  %v1283_v43 = vsub.f32 %v2298_v6, %v1282_v32  ;;  %v1295_v16 = vsub.f32 %v2300_v7, %v1294_v36 }
  0x4e   : > { %v772_v44 = vsub.f32 %v2307_v10, %v771_v19  ;;  %v784_v45 = vsub.f32 %v2310_v11, %v783_v37  ;;  %673 = vmatprep.mubr.f32.mxu0 %v2082_v1  ;;  %v2378_v46 = vsub.f32 %v158_v27, %v2343_v24  ;;  %v1301_v47 = vsub.f32 %v2325_v29, %v1300_v41 }
  0x4f   : > { %1812 = vmatmul.mubr.msk.f32.vlgmr.msra.gmra.mrb[0].mxu1 %vm160_vm0, %v2207_v3  ;;  %v2387_v49 = vsub.f32 %v157_v15, %v2341_v22  ;;  %v2392_v50 = vpack.c.bf16 %v687_v2, %v683_v61  ;;  %v2394_v51 = vpack.c.bf16 %v1204_v12, %v1200_v9  ;;  %v2397_v52 = vsub.f32 %v159_v31, %v2348_v38 }
  0x50   : > { %1835 = vmatpush1.bf16.msra.mxu1 %v1834_v28  ;;  %424 = vmatprep.mubr.f32.mxu1 %v2082_v1  ;;  %v767_v53 = vand.u32 4294901760, %v766_v42  ;;  %v779_v54 = vand.u32 4294901760, %v778_v23  ;;  %v1284_v55 = vand.u32 4294901760, %v1283_v43  ;;  %v773_v48 = vand.u32 4294901760, %v772_v44 }
  0x51   : > { %362 = vmatprep.subr.mxu1 %v2249_v30  ;;  %v1289_v30 = vsub.f32 %v2316_v14, %v1288_v40  ;;  %614 = vmatpush1.msra.mxu0 %v2221_v17  ;;  %v789_v56 = vand.u32 4294901760, %v2387_v49  ;;  %v1296_v17 = vand.u32 4294901760, %v1295_v16  ;;  %v785_v57 = vand.u32 4294901760, %v784_v45 }
  0x52   : > { %1873 = vmatprep.subr.bf16.mxu0 %v2333_v21  ;;  %v1306_v58 = vand.u32 4294901760, %v2397_v52  ;;  %v1302_v59 = vand.u32 4294901760, %v1301_v47  ;;  %v795_v60 = vand.u32 4294901760, %v2351_v39  ;;  %v1312_v61 = vand.u32 4294901760, %v2378_v46 }
  0x53   : > { %1814 = vmatmul.mubr.msk.f32.vlgmr.msra.gmra.mrb[0].mxu0 %vm160_vm0, %v2207_v3  ;;  %v790_v62 = vsub.f32 %v2387_v49, %v789_v56  ;;  %v1852_v4 = vpack.c.bf16 %v779_v54, %v767_v53  ;;  %v1876_v5 = vpack.c.bf16 %v1296_v17, %v1284_v55  ;;  %v1854_v9 = vpack.c.bf16 %v785_v57, %v773_v48 }
  0x54   : > { %365 = vmatpush1.msra.mxu1 %v2239_v25  ;;  %v1290_v25 = vand.u32 4294901760, %v1289_v30  ;;  %1875 = vmatpush1.bf16.msra.mxu0 %v2394_v51  ;;  %v1307_v2 = vsub.f32 %v2397_v52, %v1306_v58  ;;  %v796_v13 = vsub.f32 %v2351_v39, %v795_v60  ;;  %v1313_v15 = vsub.f32 %v2378_v46, %v1312_v61 }
  0x55   : > { %1849 = vmatprep.subr.bf16.mxu1 %v2331_v20  ;;  %1207 = vmatprep.subr.mxu0 %v2348_v38  ;;  %v791_v27 = vand.u32 4294901760, %v790_v62  ;;  %v1856_v23 = vpack.c.bf16 %v2294_v0, %v2292_v63  ;;  %v1880_v43 = vpack.c.bf16 %v2300_v7, %v2298_v6  ;;  %v1882_v16 = vpack.c.bf16 %v2325_v29, %v2316_v14 }
  0x56   : > { %1268 = vmatprep.mubr.f32.mxu0 %v2082_v1  ;;  %v1878_v12 = vpack.c.bf16 %v1302_v59, %v1290_v25  ;;  %v1308_v28 = vand.u32 4294901760, %v1307_v2  ;;  %v797_v31 = vand.u32 4294901760, %v796_v13  ;;  %v1314_v42 = vand.u32 4294901760, %v1313_v15 }
  0x57   : > { %427 = vmatmul.mubr.f32.vlgmr.msra.gmra.mrb[0].mxu1 %v2214_v8  ;;  %v1864_v44 = vpack.c.bf16 %v777_v35, %v765_v34  ;;  %v1888_v45 = vpack.c.bf16 %v1294_v36, %v1282_v32  ;;  %v1890_v63 = vpack.c.bf16 %v1300_v41, %v1288_v40 }
  0x58   : > { %1851 = vmatpush1.bf16.msra.mxu1 %v2392_v50  ;;  %751 = vmatprep.mubr.f32.mxu1 %v2082_v1 }
  0x59   : > { %690 = vmatprep.subr.mxu1 %v2341_v22  ;;  %1209 = vmatpush1.msra.mxu0 %v2343_v24 }
  0x5a   : > { %1274 = vmatmul.mubr.f32.vlgmr.msra.gmra.mrb[2].mxu0 %v2257_v33  ;;  %1877 = vmatprep.subr.bf16.mxu0 %v1876_v5 }
  0x5b   : > { %1879 = vmatpush1.bf16.msra.mxu0 %v1878_v12  ;;  %1374 = vmatprep.mubr.f32.mxu0 %v2082_v1 }
  0x5c   : > { %692 = vmatpush1.msra.mxu1 %v2319_v26  ;;  %1309 = vmatprep.subr.mxu0 %v1308_v28 }
  0x5d   : > { %757 = vmatmul.mubr.f32.vlgmr.msra.gmra.mrb[2].mxu1 %v2257_v33  ;;  %1853 = vmatprep.subr.bf16.mxu1 %v1852_v4  ;;  %v1858_v33 = vpack.c.bf16 %v2310_v11, %v2307_v10 }
  0x5e   : > { %1855 = vmatpush1.bf16.msra.mxu1 %v1854_v9  ;;  %857 = vmatprep.mubr.f32.mxu1 %v2082_v1 }
  0x5f   : > { %792 = vmatprep.subr.mxu1 %v791_v27  ;;  %1315 = vmatpush1.msra.mxu0 %v1314_v42 }
  0x60   : > { %1881 = vmatprep.subr.bf16.mxu0 %v1880_v43 }
  0x62   : > { %798 = vmatpush1.msra.mxu1 %v797_v31  ;;  %1818 = vmatmul.mubr.msk.f32.vlgmr.msra.gmra.mrb[2].mxu0 %vm160_vm0, %v2207_v3 }
  0x63   : > { %1857 = vmatprep.subr.bf16.mxu1 %v1856_v23  ;;  %1883 = vmatpush1.bf16.msra.mxu0 %v1882_v16 }
  0x64   : > { %1396 = vmatprep.subr.mxu0 %v2397_v52  ;;  %1458 = vmatprep.mubr.f32.mxu0 %v2082_v1 }
  0x65   : > { %1815 = vmatmul.mubr.msk.f32.vlgmr.msra.gmra.mrb[2].mxu1 %vm160_vm0, %v2207_v3 }
  0x66   : > { %1859 = vmatpush1.bf16.msra.mxu1 %v1858_v33  ;;  %941 = vmatprep.mubr.f32.mxu1 %v2082_v1 }
  0x67   : > { %879 = vmatprep.subr.mxu1 %v2387_v49  ;;  %1399 = vmatpush1.msra.mxu0 %v2378_v46 }
  0x68   : > { %1885 = vmatprep.subr.bf16.mxu0 %v2333_v21 }
  0x6a   : > { %882 = vmatpush1.msra.mxu1 %v2351_v39  ;;  %1461 = vmatmul.mubr.f32.vlgmr.msra.gmra.mrb[2].mxu0 %v2214_v8 }
  0x6b   : > { %1861 = vmatprep.subr.bf16.mxu1 %v2331_v20  ;;  %1887 = vmatpush1.bf16.msra.mxu0 %v2394_v51 }
  0x6c   : > { %1476 = vmatprep.subr.mxu0 %v2348_v38  ;;  %1537 = vmatprep.mubr.f32.mxu0 %v2082_v1 }
  0x6d   : > { %944 = vmatmul.mubr.f32.vlgmr.msra.gmra.mrb[2].mxu1 %v2214_v8  ;;  %v1866_v8 = vpack.c.bf16 %v783_v37, %v771_v19 }
  0x6e   : > { %1863 = vmatpush1.bf16.msra.mxu1 %v2392_v50  ;;  %1020 = vmatprep.mubr.f32.mxu1 %v2082_v1 }
  0x6f   : > { %959 = vmatprep.subr.mxu1 %v2341_v22  ;;  %1478 = vmatpush1.msra.mxu0 %v2343_v24 }
  0x70   : > { %1889 = vmatprep.subr.bf16.mxu0 %v1888_v45 }
  0x72   : > { %961 = vmatpush1.msra.mxu1 %v2319_v26  ;;  %1541 = vmatmul.mubr.f32.vlgmr.msra.gmra.mrb[2].mxu0 %v2224_v18 }
  0x73   : > { %1865 = vmatprep.subr.bf16.mxu1 %v1864_v44  ;;  %1891 = vmatpush1.bf16.msra.mxu0 %v1890_v63 }
  0x74   : > { %1566 = vmatprep.subr.mxu0 %v1306_v58  ;;  %1629 = vmatprep.mubr.f32.mxu0 %v2082_v1 }
  0x75   : > { %1024 = vmatmul.mubr.f32.vlgmr.msra.gmra.mrb[2].mxu1 %v2224_v18 }
  0x76   : > { %1867 = vmatpush1.bf16.msra.mxu1 %v1866_v8  ;;  %1112 = vmatprep.mubr.f32.mxu1 %v2082_v1 }
  0x77   : > { %1049 = vmatprep.subr.mxu1 %v789_v56  ;;  %1570 = vmatpush1.msra.mxu0 %v1312_v61 }
  0x78   : > { %1893 = vmatprep.subr.bf16.mxu0 %v2333_v21 }
  0x7a   : > { %1053 = vmatpush1.msra.mxu1 %v795_v60  ;;  %1819 = vmatmul.mubr.msk.f32.vlgmr.msra.gmra.mrb[2].mxu0 %vm160_vm0, %v2207_v3 }
  0x7b   : > { %1869 = vmatprep.subr.bf16.mxu1 %v2331_v20  ;;  %1895 = vmatpush1.bf16.msra.mxu0 %v2394_v51 }
  0x7c   : > { %1646 = vmatprep.subr.mxu0 %v2348_v38  ;;  %1707 = vmatprep.mubr.f32.mxu0 %v2082_v1 }
  0x7d   : > { %1816 = vmatmul.mubr.msk.f32.vlgmr.msra.gmra.mrb[2].mxu1 %vm160_vm0, %v2207_v3 }
  0x7e   : > { %1871 = vmatpush1.bf16.msra.mxu1 %v2392_v50  ;;  %1190 = vmatprep.mubr.f32.mxu1 %v2082_v1 }
  0x7f   : > { %1129 = vmatprep.subr.mxu1 %v2341_v22  ;;  %1648 = vmatpush1.msra.mxu0 %v2343_v24 }
  0x82   : > { %1131 = vmatpush1.msra.mxu1 %v2319_v26  ;;  %1820 = vmatmul.mubr.msk.f32.vlgmr.msra.gmra.mrb[2].mxu0 %vm160_vm0, %v2207_v3 }
  0x85   : > { %1817 = vmatmul.mubr.msk.f32.vlgmr.msra.gmra.mrb[2].mxu1 %vm160_vm0, %v2207_v3 }
 0x126   : > { %v676_v0 = vpop.f32.mrb[0].mxu0 }
 0x127   : > { %v678_v10 = vpop.f32.mrb[1].mxu0 }
 0x12a   : > { %v428_v18 = vpop.f32.mrb[0].mxu1 }
 0x12b   : > { %v1896_v6 = vadd.f32 %v676_v0, %v428_v18  ;;  %v430_v7 = vpop.f32.mrb[1].mxu1 }
 0x12c   : > { %v1897_v11 = vadd.f32 %v678_v10, %v430_v7 }
 0x12d   : > { %1715 = vst [vmem:[%s135_s22] sm:$0xff] %v1896_v6 }
 0x12e   : > { %1716 = vst [vmem:[%s135_s22 + $0x8] sm:$0xff] %v1897_v11 }
 0x155   : > { %v1710_v14 = vpop.f32.mrb[2].mxu0 }
 0x156   : > { %1719 = vst [vmem:[%s135_s22 + $0x20] sm:$0xff] %v1710_v14  ;;  %v1712_v26 = vpop.f32.mrb[3].mxu0 }
 0x157   : > { %1720 = vst [vmem:[%s135_s22 + $0x28] sm:$0xff] %v1712_v26 }
 0x158   : > { %v1193_v1 = vpop.f32.mrb[2].mxu1 }
 0x159   : > { %1717 = vst [vmem:[%s135_s22 + $0x10] sm:$0xff] %v1193_v1  ;;  %v1195_v3 = vpop.f32.mrb[3].mxu1 }
 0x15a   : > { %1718 = vst [vmem:[%s135_s22 + $0x18] sm:$0xff] %v1195_v3 }
 0x15b   : > { %2024 = shalt.err (!%p2021_p3)
}
 0x15c   : > { %s2025_s13 = scalar_lea.hbm %s2514_s2, 768  ;;  %s2029_s20 = scalar_lea.hbm %s2559_s1, 1536 }
 0x15d   : > { %p2026_p5 = scmp.ne.s32.totalorder %s2514_s2, %s2025_s13  ;;  %p2030_p9 = scmp.lt.u32.totalorder %s2514_s2, %s2559_s1 }
 0x15e   : > { %p2031_p0 = scmp.lt.u32.totalorder %s2029_s20, %s2025_s13  ;;  %p2033_p6 = scmp.lt.u32.totalorder %s2025_s13, %s2514_s2 }
 0x15f   : > { %p2027_p7 = pnand %p2026_p5, %p2566_p11 }
 0x160   : > { %p2032_p2 = por %p2031_p0, %p2030_p9 }
 0x161   : > { %p2028_p8 = pneg %p2027_p7 }
 0x162   : > { %p2034_p12 = por %p2033_p6, %p2032_p2 }
 0x164   : > { %p2035_p13 = pnand %p2034_p12, %p2028_p8 }
 0x166   : > { %2038 = shalt.err (!%p2035_p13)
}
 0x167   : > { %1933 = dma.vmem_to_hbm [thread:$0]  (%p2566_p11), %s2516_s27, 768, %s2514_s2, %s1722_s10  }
 0x168 PF: > { %s1748_s24 = sand.u32 1, %s2065_s6   ;;  %p2567_p4 = scmp.ne.s32.totalorder %s2563_s18, 0 }
 0x169   : > { %p2568_p10 = scmp.ge.s32.totalorder %s2077_s9, 2  ;;  %s1749_s26 = scalar_lea.sflag [#allocation4], %s1748_s24 }
 0x16b   : > { %p1940_p1 = pnand %p2568_p10, %p2567_p4 }
 0x16d   : > { %2060 = dma.done.wait (!%p1940_p1), %s1749_s26, 768  }
 0x16e   : > { %2062 = vsyncadd (!%p1940_p1), %s1749_s26, 4294966528  ;;  %p14_p3 = scmp.ge.s32.totalorder %s2119_s12, 4   ;;  %s2569_s6 = smov %s2069_s7 }
 0x16f   : > { %s2570_s7 = smov %s2073_s8  ;;  %s2571_s8 = smov %s2131_s15 }
 0x170   : > { %s2572_s9 = smov %s2119_s12  ;;  %16 = sbr.rel (!%p14_p3) target bundleno = 5 (0x5), region = 69 }
 0x177   :  { %1754 = vsyncpa [#allocation3], 1 }
 0x178   :  { %1756 = vsyncpa [#allocation3 + $0x1], 1 }
 0x179   :  { %1757 = vsyncpa [#allocation4], 1 }
 0x17a   :  { %1759 = vsyncpa [#allocation4 + $0x1], 1 }

</bundles_post_ra>
